<compile_context>
chip_gen: v7x
topology: tpu7x:2x2x1
jax: 0.10.0
libtpu: 0.0.40
codegen_flags: <defaults>
</compile_context>

<pallas_src>
import jax
import jax.numpy as jnp
from jax import lax
from jax.experimental import pallas as pl
from jax.experimental.pallas import tpu as pltpu


def _round_up(x, m):
    return ((x + m - 1) // m) * m


def _maxpool_kernel(x_ref, o_ref):
    # x_ref: (K, TILE_R, TILE_L) window-major stacked input tile.
    # o_ref: (TILE_R, TILE_L)    pooled output tile (lane-dense last dim).
    # Reduction over the leading (untiled) axis lowers to K-1 elementwise vmax
    # ops on the VPU; no cross-lane shuffles, no MXU.
    o_ref[...] = jnp.max(x_ref[...], axis=0)


def _xla_maxpool(x, k):
    """lax.reduce_window path: tiny-problem fast path and reference."""
    p = max(0, k - 1)
    left = p // 2
    right = p - left
    xp = jnp.pad(x, ((0, 0), (0, 0), (left, right)))  # zeros join the max
    return lax.reduce_window(
        xp, -jnp.inf, lax.max,
        window_dimensions=(1, 1, k), window_strides=(1, 1, k),
        padding="VALID")


def _choose_tiles(rows, out_len, k, itemsize):
    lane = 128
    sub = max(8, 32 // itemsize)      # (8,128) for f32, (16,128) for bf16, ...
    budget = 16 << 20                 # double-buffered in+out working-set target

    tile_r = 256
    # Lane tile from the budget: per-step VMEM ~ 2*(k+1)*tile_r*tile_l*itemsize.
    tile_l = (budget // (2 * (k + 1) * tile_r * itemsize)) // lane * lane
    tile_l = max(lane, min(tile_l, 2048))
    # Huge-k safety valve: shrink the row tile rather than blow past the budget.
    while 2 * (k + 1) * tile_r * tile_l * itemsize > (24 << 20) and tile_r > sub:
        tile_r = max(sub, _round_up(tile_r // 2, sub))

    # Shrink to the actual problem (avoids DMA-ing nearly-empty padding tiles).
    n_r = max(1, pl.cdiv(rows, tile_r))
    tile_r = _round_up(pl.cdiv(rows, n_r), sub)
    n_l = max(1, pl.cdiv(out_len, tile_l))
    tile_l = _round_up(pl.cdiv(out_len, n_l), lane)

    # Ensure >= 2 parallel blocks when splittable so v7x's second TensorCore
    # (and megacore sharding in general) gets work.
    if pl.cdiv(rows, tile_r) * pl.cdiv(out_len, tile_l) < 2:
        if out_len > lane:
            tile_l = _round_up(pl.cdiv(out_len, 2), lane)
        elif rows > sub:
            tile_r = _round_up(pl.cdiv(rows, 2), sub)
    return tile_r, tile_l


def maxpool1d_pad_same(x, kernel_size, *, use_pallas=None):
    """x: (N, C, L) -> (N, C, ceil(L / kernel_size)); matches MyMaxPool1dPadSame."""
    n, c, in_len = x.shape
    k = int(kernel_size)
    p = max(0, k - 1)
    left = p // 2
    out_len = (in_len + p - k) // k + 1      # floor mode on padded == ceil(L/k)
    rows = n * c

    # Tiny problems: wrapper copies + kernel launch dominate; XLA primitive wins.
    if use_pallas is None:
        use_pallas = rows * out_len >= (1 << 17)
    if not use_pallas:
        return _xla_maxpool(x, k)

    itemsize = jnp.dtype(x.dtype).itemsize
    tile_r, tile_l = _choose_tiles(rows, out_len, k, itemsize)
    rows_p = _round_up(rows, tile_r)
    len_p = _round_up(out_len, tile_l)

    # Elements past `kept` never fall inside a pooling window (ceil_mode=False).
    kept = min(in_len, out_len * k - left)
    x2d = x.reshape(rows, in_len)
    if kept < in_len:
        x2d = x2d[:, :kept]
    # ONE pad: left "same" zero-pad, right zero-fill of the used region, and the
    # row / lane tile-alignment padding, all in a single pass.  (Padded outputs
    # are cropped below, so zero fill is safe.)
    x_flat = jnp.pad(x2d, ((0, rows_p - rows), (left, len_p * k - left - kept)))
    # Free contiguous reshape, then the single window-major relayout copy:
    # stk[kk, r, j] = padded[r, j*k + kk].
    x_stk = jnp.transpose(x_flat.reshape(rows_p, len_p, k), (2, 0, 1))

    grid = (rows_p // tile_r, len_p // tile_l)

    cost = pl.CostEstimate(
        flops=(k - 1) * rows_p * len_p,
        transcendentals=0,
        bytes_accessed=(k + 1) * rows_p * len_p * itemsize,
    )
    vmem_need = 2 * (k + 1) * tile_r * tile_l * itemsize
    vmem_limit = int(min(48 << 20, max(32 << 20, 2 * vmem_need)))

    out = pl.pallas_call(
        _maxpool_kernel,
        out_shape=jax.ShapeDtypeStruct((rows_p, len_p), x.dtype),
        grid=grid,
        in_specs=[pl.BlockSpec((k, tile_r, tile_l), lambda i, j: (0, i, j))],
        out_specs=pl.BlockSpec((tile_r, tile_l), lambda i, j: (i, j)),
        compiler_params=pltpu.CompilerParams(
            dimension_semantics=("parallel", "parallel"),
            vmem_limit_bytes=vmem_limit,
            allow_input_fusion=[True],
        ),
        cost_estimate=cost,
    )(x_stk)

    # Output is already (rows, out_len)-major: crop + reshape, no transpose.
    return out[:rows, :out_len].reshape(n, c, out_len)


if __name__ == "__main__":
    key = jax.random.PRNGKey(0)
    cases = [
        ((2, 4, 16), 3),    # module-sized smoke test
        ((2, 4, 16), 2),    # even kernel: asymmetric (0, 1) zero pad
        ((2, 4, 16), 5),    # wider window than the test stride pattern
        ((2, 4, 15), 3),    # L % k == 0: tail element never pooled (crop path)
        ((4, 8, 800), 3),   # multi-block grid + tile-alignment pad/crop
    ]
    for i, (shape, ksize) in enumerate(cases):
        key, sub = jax.random.split(key)
        x = jax.random.normal(sub, shape, dtype=jnp.float32)
        y = jax.block_until_ready(maxpool1d_pad_same(x, ksize, use_pallas=True))
        y_ref = jax.block_until_ready(_xla_maxpool(x, ksize))
        expect_len = -(-shape[-1] // ksize)
        assert y.shape == (shape[0], shape[1], expect_len), (y.shape, shape, ksize)
        assert y.shape == y_ref.shape
        assert jnp.array_equal(y, y_ref), f"mismatch for case {i}: {shape}, k={ksize}"

    # Auto-dispatch path (small problem -> lax.reduce_window fast path).
    x = jax.random.normal(jax.random.PRNGKey(0), (2, 4, 16), dtype=jnp.float32)
    y_auto = jax.block_until_ready(maxpool1d_pad_same(x, 3))
    assert jnp.array_equal(y_auto, _xla_maxpool(x, 3))

    print("KERNEL_OK")
</pallas_src>

<mosaic_0001>
module attributes {stable_mosaic.version = 11 : i64} {
  func.func @_maxpool_kernel(%arg0: i32, %arg1: i32, %arg2: memref<3x8x128xf32, #tpu.memory_space<vmem>>, %arg3: memref<8x128xf32, #tpu.memory_space<vmem>>) attributes {dimension_semantics = [#tpu.dimension_semantics<parallel>, #tpu.dimension_semantics<parallel>], iteration_bounds = array<i64: 1, 1>, scalar_prefetch = 0 : i64, scratch_operands = 0 : i64, tpu.core_type = #tpu.core_type<tc>, window_params = [{transform_indices = @transform_0, window_bounds = array<i64: 3, 8, 128>}, {transform_indices = @transform_1, window_bounds = array<i64: 8, 128>}]} {
    %c0 = arith.constant 0 : index
    %c0_0 = arith.constant 0 : index
    %c0_1 = arith.constant 0 : index
    %0 = vector.load %arg2[%c0, %c0_0, %c0_1] : memref<3x8x128xf32, #tpu.memory_space<vmem>>, vector<3x8x128xf32>
    %cst = arith.constant dense<0xFF800000> : vector<8x128xf32>
    %1 = vector.multi_reduction <maximumf>, %0, %cst [0] : vector<3x8x128xf32> to vector<8x128xf32>
    %c0_2 = arith.constant 0 : index
    %c0_3 = arith.constant 0 : index
    %2 = vector.load %arg3[%c0_2, %c0_3] : memref<8x128xf32, #tpu.memory_space<vmem>>, vector<8x128xf32>
    tpu.vector_store %arg3[%c0_2, %c0_3], %1 {strides = array<i32>} : memref<8x128xf32, #tpu.memory_space<vmem>>, vector<8x128xf32>,
    return
  }
  func.func @transform_0(%arg0: i32, %arg1: i32) -> (i32, i32, i32) {
    %c0_i32 = arith.constant 0 : i32
    %c0_i32_0 = arith.constant 0 : i32
    return %c0_i32, %arg0, %arg1 : i32, i32, i32
  }
  func.func @transform_1(%arg0: i32, %arg1: i32) -> (i32, i32) {
    %c0_i32 = arith.constant 0 : i32
    return %arg0, %arg1 : i32, i32
  }
}

</mosaic_0001>

<bundles_post_ra>
// kernel: tpu_custom_call.1
= control target key start
LH: loop header
LB: loop body
LE: loop exit
PB: predicated region body
PF: predicated region fallthrough
CT: control target
= control target key end

     0   :  { %6 = vsyncpa [#allocation3], 0  ;;  %s134_s0 = inlined_call_operand.hbm [shape: f32[3,8,128], index: 0, kind: input, shape index: {}]   ;;  %s135_s1 = inlined_call_operand.hbm [shape: f32[8,128], index: 1, kind: output, shape index: {}]  }
   0x1   :  { %7 = vsyncpa [#allocation4], 0  ;;  %s96_s6 = smov [#allocation2]   ;;  %s48_s10 = scalar_lea.hbm %s134_s0, 384 }
   0x2   :  { %s13_s7 = sshll.u32 %s96_s6, 4  ;;  %p49_p0 = scmp.ne.s32.totalorder %s134_s0, %s48_s10  ;;  %s14_s7 = int_to_ptr.vmem [resolvable:$true] %s13_s7 }
   0x3   :  { %p52_p1 = scmp.lt.u32.totalorder %s48_s10, %s134_s0 }
   0x5   :  { %p54_p2 = pnand %p52_p1, %p49_p0 }
   0x7   :  { %57 = shalt.err (!%p54_p2)
}
   0x8   :  { %s58_s15 = scalar_lea.vmem %s14_s7, 384  ;;  %p63_p4 = scmp.lt.s32.totalorder %s14_s7, %s14_s7 }
   0x9   :  { %p59_p3 = scmp.ne.s32.totalorder %s14_s7, %s58_s15  ;;  %p64_p5 = scmp.lt.s32.totalorder %s58_s15, %s58_s15 }
   0xb   :  { %p65_p6 = por %p64_p5, %p63_p4 }
   0xd   :  { %p66_p7 = pnand %p65_p6, %p59_p3 }
   0xf   :  { %69 = shalt.err (!%p66_p7)
}
  0x10   :  { %s97_s16 = smov 128   ;;  %s98_s17 = smov 8  }
  0x11   :  { %19 = dma.hbm_to_vmem [thread:$0]  %s134_s0, 384, %s14_s7, [#allocation3], %s97_s16, %s97_s16, %s98_s17  }
  0x12   :  { %92 = dma.done.wait [#allocation3], 384  }
  0x13   :  { %93 = vsyncadd [#allocation3], 4294966912  ;;  %v23_v0 = vld [vmem:[#allocation2] sm:$0xff]  ;;  %v24_v1 = vld [vmem:[#allocation2 + $0x8] sm:$0xff]  ;;  %s99_s20 = smov [#allocation5]  }
  0x14   :  { %v25_v2 = vld [vmem:[#allocation2 + $0x10] sm:$0xff]  ;;  %s35_s21 = sshll.u32 %s99_s20, 4  ;;  %v26_v3 = vmax.f32 %v23_v0, %v24_v1  ;;  %s36_s21 = int_to_ptr.vmem [resolvable:$true] %s35_s21 }
  0x15   :  { %s70_s22 = scalar_lea.vmem %s36_s21, 128  ;;  %p75_p9 = scmp.lt.s32.totalorder %s36_s21, %s36_s21 }
  0x16   :  { %v27_v4 = vmax.f32 %v26_v3, %v25_v2  ;;  %p71_p8 = scmp.ne.s32.totalorder %s36_s21, %s70_s22  ;;  %p76_p10 = scmp.lt.s32.totalorder %s70_s22, %s70_s22 }
  0x18   :  { %28 = vst [vmem:[#allocation5] sm:$0xff] %v27_v4  ;;  %p77_p11 = por %p76_p10, %p75_p9 }
  0x1a   :  { %p78_p12 = pnand %p77_p11, %p71_p8 }
  0x1c   :  { %81 = shalt.err (!%p78_p12)
}
  0x1d   :  { %s82_s24 = scalar_lea.hbm %s135_s1, 128 }
  0x1e   :  { %p83_p13 = scmp.ne.s32.totalorder %s135_s1, %s82_s24  ;;  %p86_p0 = scmp.lt.u32.totalorder %s82_s24, %s135_s1 }
  0x20   :  { %p88_p1 = pnand %p86_p0, %p83_p13 }
  0x22   :  { %91 = shalt.err (!%p88_p1)
}
  0x23   :  { %38 = dma.vmem_to_hbm [thread:$0]  %s36_s21, 128, %s135_s1, [#allocation4]  }
  0x24   :  { %94 = dma.done.wait [#allocation4], 128  }
  0x25   :  { %95 = vsyncadd [#allocation4], 4294967168 }
  0x26   :  { %42 = vsyncpa [#allocation3], 1 }
  0x27   :  { %43 = vsyncpa [#allocation4], 1 }

</bundles_post_ra>
